<compile_context>
chip_gen: v7x
topology: tpu7x:2x2x1
jax: 0.10.0
libtpu: 0.0.40
codegen_flags: <defaults>
</compile_context>

<pallas_src>
import functools

import jax
import jax.numpy as jnp
import numpy as np
from jax.experimental import pallas as pl
from jax.experimental.pallas import tpu as pltpu


def _ce_partial_kernel(logits_ref, targets_ref, out_ref, *, total_n: int):
    """Accumulates sum(cross_entropy) for this core's slice of the batch.

    out_ref is a lane-dense (1, 128) f32 block per core; every lane ends up
    holding the same per-core partial sum.
    """
    c = pl.program_id(0)           # core / parallel axis
    i = pl.program_id(1)           # sequential reduction axis over batch tiles
    steps = pl.num_programs(1)

    @pl.when(i == 0)
    def _():
        out_ref[...] = jnp.zeros_like(out_ref)

    x = logits_ref[...]                                   # (tn, C), native dtype
    tgt = targets_ref[...]                                # (tn, 1) int32
    tn, num_classes = x.shape

    # Target-logit gather: (1, C) iota broadcast against the (tn, 1) target
    # column (no (tn, C) int32 temporary).  Exact in bf16 (pure select + sum of
    # a single nonzero per row).
    class_ids = jax.lax.broadcasted_iota(jnp.int32, (1, num_classes), 1)
    onehot = class_ids == tgt                             # (tn, C) bool
    tgt_logit = jnp.sum(jnp.where(onehot, x, jnp.zeros((), x.dtype)),
                        axis=-1, keepdims=True)           # (tn, 1), native dtype

    # Numerically-stable log-sum-exp; max stays in the input dtype (exact),
    # only the exp/log chain is upcast to f32.
    m = jnp.max(x, axis=-1, keepdims=True)                # (tn, 1), native dtype
    ex = jnp.exp((x - m).astype(jnp.float32))             # (tn, C) f32
    lse = m.astype(jnp.float32) + jnp.log(
        jnp.sum(ex, axis=-1, keepdims=True))              # (tn, 1) f32
    ce = lse - tgt_logit.astype(jnp.float32)              # (tn, 1) f32

    # Row-validity mask from the LOGICAL block index (unclamped), so both the
    # ragged last tile and the fully-phantom block on core 1 contribute zero.
    # The mask is applied before any cross-row combine.
    block_idx = c * steps + i
    row_ids = block_idx * tn + jax.lax.broadcasted_iota(jnp.int32, (tn, 1), 0)
    masked_ce = jnp.where(row_ids < total_n, ce, 0.0)     # (tn, 1) f32

    # Per-step scalar partial (broadcast across the 128-lane output block).
    out_ref[...] += jnp.sum(masked_ce, axis=0, keepdims=True)


def pre_averaged_focal_loss(logits, targets, *, alpha=1.0, gamma=2.0, tn=None):
    """logits: [N, C] float, targets: [N] int. Returns scalar float32 focal loss."""
    N, C = logits.shape
    targets2d = targets.astype(jnp.int32).reshape(N, 1)
    itemsize = np.dtype(logits.dtype).itemsize

    # ---- Tile sizing: byte-budget driven (review item #1) -------------------
    if tn is None:
        row_bytes = C * itemsize          # one logits row
        f32_row = C * 4                   # one f32 temp row
        # Per batch row of VMEM: double-buffered logits + double-buffered
        # lane-padded (tn, 1) int32 targets (512 B/row) + headroom for ~4
        # full-block f32 temporaries the compiler may materialize.
        per_row = 2 * row_bytes + 2 * 512 + 4 * f32_row
        budget = 24 * 1024 * 1024
        tn = budget // per_row
        tn = max(8, min(16384, (tn // 8) * 8))
    tn = int(min(tn, max(8, ((N + 7) // 8) * 8)))   # don't exceed (rounded-up) N
    tn = max(8, (tn // 8) * 8)

    nblocks = (N + tn - 1) // tn
    # ---- Always split across 2 cores when possible (review item #2) --------
    ncores = 2 if nblocks >= 2 else 1
    steps = (nblocks + ncores - 1) // ncores
    last_block = nblocks - 1

    def blk_map(c, i):
        # Clamp the phantom block (odd nblocks, core 1) so the DMA re-reads the
        # last real block; the in-kernel logical-row mask zeroes it out.
        return (jnp.minimum(c * steps + i, last_block), 0)

    kernel = functools.partial(_ce_partial_kernel, total_n=N)

    out = pl.pallas_call(
        kernel,
        out_shape=jax.ShapeDtypeStruct((1, ncores * 128), jnp.float32),
        grid_spec=pltpu.PrefetchScalarGridSpec(
            num_scalar_prefetch=0,
            grid=(ncores, steps),
            in_specs=[
                pl.BlockSpec((tn, C), blk_map),
                pl.BlockSpec((tn, 1), blk_map),
            ],
            # Lane-dense per-core output block; distinct block per core along
            # the parallel axis, resident across the reduction axis.
            out_specs=pl.BlockSpec((1, 128), lambda c, i: (0, c)),
        ),
        compiler_params=pltpu.CompilerParams(
            dimension_semantics=("parallel", "arbitrary"),
            vmem_limit_bytes=40 * 1024 * 1024,
        ),
    )(logits, targets2d)

    # Tiny scalar epilogue: combine per-core partials + focal transform.
    partials = out.reshape(ncores, 128)[:, 0]
    avg_ce = jnp.sum(partials) / jnp.float32(N)
    p = jnp.exp(-avg_ce)
    return jnp.float32(alpha) * (1.0 - p) ** jnp.float32(gamma) * avg_ce


# ------------------------------ reference & tests -----------------------------

def _reference(logits, targets, alpha=1.0, gamma=2.0):
    logp = jax.nn.log_softmax(logits.astype(jnp.float32), axis=-1)
    ce = -jnp.mean(
        jnp.take_along_axis(logp, targets[:, None].astype(jnp.int32), axis=-1))
    p = jnp.exp(-ce)
    return alpha * (1.0 - p) ** gamma * ce


def _check(N, C, key, dtype=jnp.float32, rtol=1e-5, atol=1e-6, **kw):
    k1, k2 = jax.random.split(key)
    logits = jax.random.normal(k1, (N, C), dtype=dtype)
    targets = jax.random.randint(k2, (N,), 0, C, dtype=jnp.int32)
    loss = jax.block_until_ready(
        pre_averaged_focal_loss(logits, targets, alpha=1.0, gamma=2.0, **kw))
    ref = jax.block_until_ready(_reference(logits, targets, alpha=1.0, gamma=2.0))
    assert np.allclose(np.asarray(loss), np.asarray(ref), rtol=rtol, atol=atol), (
        (N, C, str(dtype), kw), loss, ref)


if __name__ == "__main__":
    key = jax.random.PRNGKey(0)
    k1, k2, k3, k4, k5 = jax.random.split(key, 5)

    # Basic small shape (single block, one core).
    _check(16, 32, k1)
    # Ragged batch (N not a multiple of 8 / of the tile) -> in-kernel row mask.
    _check(20, 32, k2)
    # Forced small tile, even block count -> multi-step + 2-way core split.
    _check(32, 32, k3, tn=8)
    # Odd block count -> cdiv core split with a fully-phantom (masked) block.
    _check(40, 32, k4, tn=8)
    # bf16 input path (native-dtype max/gather, f32 exp chain), looser tolerance.
    _check(48, 32, k5, dtype=jnp.bfloat16, rtol=3e-2, atol=1e-3, tn=16)

    print("KERNEL_OK")
</pallas_src>

<mosaic_0001>
module attributes {stable_mosaic.version = 11 : i64} {
  func.func @_ce_partial_kernel(%arg0: i32, %arg1: i32, %arg2: memref<16x32xf32, #tpu.memory_space<vmem>>, %arg3: memref<16x1xi32, #tpu.memory_space<vmem>>, %arg4: memref<1x128xf32, #tpu.memory_space<vmem>>) attributes {dimension_semantics = [#tpu.dimension_semantics<parallel>, #tpu.dimension_semantics<arbitrary>], iteration_bounds = array<i64: 1, 1>, scalar_prefetch = 0 : i64, scratch_operands = 0 : i64, tpu.core_type = #tpu.core_type<tc>, window_params = [{transform_indices = @transform_0, window_bounds = array<i64: 16, 32>}, {transform_indices = @transform_1, window_bounds = array<i64: 16, 1>}, {transform_indices = @transform_2, window_bounds = array<i64: 1, 128>}]} {
    %c0_i32 = arith.constant 0 : i32
    %0 = arith.cmpi eq, %arg1, %c0_i32 : i32
    %1 = arith.extui %0 : i1 to i32
    %c0_i32_0 = arith.constant 0 : i32
    %2 = arith.cmpi ne, %1, %c0_i32_0 : i32
    scf.if %2 {
      %cst_14 = arith.constant 0.000000e+00 : f32
      %39 = vector.broadcast %cst_14 : f32 to vector<1x128xf32>
      %c0_15 = arith.constant 0 : index
      %c0_16 = arith.constant 0 : index
      %40 = vector.load %arg4[%c0_15, %c0_16] : memref<1x128xf32, #tpu.memory_space<vmem>>, vector<1x128xf32>
      tpu.vector_store %arg4[%c0_15, %c0_16], %39 {strides = array<i32>} : memref<1x128xf32, #tpu.memory_space<vmem>>, vector<1x128xf32>,
    } else {
    }
    %c0 = arith.constant 0 : index
    %c0_1 = arith.constant 0 : index
    %3 = vector.load %arg2[%c0, %c0_1] : memref<16x32xf32, #tpu.memory_space<vmem>>, vector<16x32xf32>
    %c0_2 = arith.constant 0 : index
    %c0_3 = arith.constant 0 : index
    %4 = vector.load %arg3[%c0_2, %c0_3] : memref<16x1xi32, #tpu.memory_space<vmem>>, vector<16x1xi32>
    %5 = tpu.iota {dimensions = array<i32: 1>} : vector<1x32xi32>
    %6 = vector.broadcast %5 : vector<1x32xi32> to vector<16x32xi32>
    %7 = vector.broadcast %4 : vector<16x1xi32> to vector<16x32xi32>
    %8 = arith.cmpi eq, %6, %7 : vector<16x32xi32>
    %cst = arith.constant 0.000000e+00 : f32
    %9 = vector.broadcast %cst : f32 to vector<16x32xf32>
    %10 = arith.select %8, %3, %9 : vector<16x32xi1>, vector<16x32xf32>
    %cst_4 = arith.constant dense<0.000000e+00> : vector<16xf32>
    %11 = vector.multi_reduction <add>, %10, %cst_4 [1] : vector<16x32xf32> to vector<16xf32>
    %12 = vector.shape_cast %11 : vector<16xf32> to vector<16x1xf32>
    %cst_5 = arith.constant dense<0xFF800000> : vector<16xf32>
    %13 = vector.multi_reduction <maximumf>, %3, %cst_5 [1] : vector<16x32xf32> to vector<16xf32>
    %14 = vector.shape_cast %13 : vector<16xf32> to vector<16x1xf32>
    %15 = vector.broadcast %14 : vector<16x1xf32> to vector<16x32xf32>
    %16 = arith.subf %3, %15 : vector<16x32xf32>
    %17 = math.exp %16 : vector<16x32xf32>
    %cst_6 = arith.constant dense<0.000000e+00> : vector<16xf32>
    %18 = vector.multi_reduction <add>, %17, %cst_6 [1] : vector<16x32xf32> to vector<16xf32>
    %19 = vector.shape_cast %18 : vector<16xf32> to vector<16x1xf32>
    %20 = math.log %19 : vector<16x1xf32>
    %21 = arith.addf %14, %20 : vector<16x1xf32>
    %22 = arith.subf %21, %12 : vector<16x1xf32>
    %c1_i32 = arith.constant 1 : i32
    %23 = arith.muli %arg0, %c1_i32 : i32
    %24 = arith.addi %23, %arg1 : i32
    %c16_i32 = arith.constant 16 : i32
    %25 = arith.muli %24, %c16_i32 : i32
    %26 = tpu.iota {dimensions = array<i32: 0>} : vector<16x1xi32>
    %27 = vector.broadcast %25 : i32 to vector<16x1xi32>
    %28 = arith.addi %27, %26 : vector<16x1xi32>
    %c16_i32_7 = arith.constant 16 : i32
    %29 = vector.broadcast %c16_i32_7 : i32 to vector<16x1xi32>
    %30 = arith.cmpi slt, %28, %29 : vector<16x1xi32>
    %cst_8 = arith.constant 0.000000e+00 : f32
    %31 = vector.broadcast %cst_8 : f32 to vector<16x1xf32>
    %32 = arith.select %30, %22, %31 : vector<16x1xi1>, vector<16x1xf32>
    %c0_9 = arith.constant 0 : index
    %c0_10 = arith.constant 0 : index
    %33 = vector.load %arg4[%c0_9, %c0_10] : memref<1x128xf32, #tpu.memory_space<vmem>>, vector<1x128xf32>
    %cst_11 = arith.constant dense<0.000000e+00> : vector<1xf32>
    %34 = vector.multi_reduction <add>, %32, %cst_11 [0] : vector<16x1xf32> to vector<1xf32>
    %35 = vector.shape_cast %34 : vector<1xf32> to vector<1x1xf32>
    %36 = vector.broadcast %35 : vector<1x1xf32> to vector<1x128xf32>
    %37 = arith.addf %33, %36 : vector<1x128xf32>
    %c0_12 = arith.constant 0 : index
    %c0_13 = arith.constant 0 : index
    %38 = vector.load %arg4[%c0_12, %c0_13] : memref<1x128xf32, #tpu.memory_space<vmem>>, vector<1x128xf32>
    tpu.vector_store %arg4[%c0_12, %c0_13], %37 {strides = array<i32>} : memref<1x128xf32, #tpu.memory_space<vmem>>, vector<1x128xf32>,
    return
  }
  func.func @transform_0(%arg0: i32, %arg1: i32) -> (i32, i32) {
    %c1_i32 = arith.constant 1 : i32
    %0 = arith.muli %arg0, %c1_i32 : i32
    %1 = arith.addi %0, %arg1 : i32
    %c0_i32 = arith.constant 0 : i32
    %2 = arith.minsi %1, %c0_i32 : i32
    %c0_i32_0 = arith.constant 0 : i32
    %c0_i32_1 = arith.constant 0 : i32
    return %2, %c0_i32_0 : i32, i32
  }
  func.func @transform_1(%arg0: i32, %arg1: i32) -> (i32, i32) {
    %c1_i32 = arith.constant 1 : i32
    %0 = arith.muli %arg0, %c1_i32 : i32
    %1 = arith.addi %0, %arg1 : i32
    %c0_i32 = arith.constant 0 : i32
    %2 = arith.minsi %1, %c0_i32 : i32
    %c0_i32_0 = arith.constant 0 : i32
    %c0_i32_1 = arith.constant 0 : i32
    return %2, %c0_i32_0 : i32, i32
  }
  func.func @transform_2(%arg0: i32, %arg1: i32) -> (i32, i32) {
    %c0_i32 = arith.constant 0 : i32
    %c0_i32_0 = arith.constant 0 : i32
    return %c0_i32, %arg0 : i32, i32
  }
}

</mosaic_0001>

<bundles_post_ra>
// kernel: tpu_custom_call.1
= control target key start
LH: loop header
LB: loop body
LE: loop exit
PB: predicated region body
PF: predicated region fallthrough
CT: control target
= control target key end

     0   :  { %vm97_vm0 = vcmask 261120   ;;  %v215_v4 = vmov 0   ;;  %s263_s0 = inlined_call_operand.vmem [shape: f32[16,32], index: 0, kind: input, shape index: {}]   ;;  %s264_s1 = inlined_call_operand.vmem [shape: s32[16,1], index: 1, kind: input, shape index: {}]   ;;  %s265_s2 = inlined_call_operand.hbm [shape: f32[1,128], index: 2, kind: output, shape index: {}]  }
   0x1   :  { %v81_v0 = vld [vmem:[%s263_s0] sm:$0xff]  ;;  %v82_v1 = vld [vmem:[%s263_s0 + $0x8] sm:$0xff]  ;;  %181 = vset.pattern.permute.xlu1 %v215_v4  ;;  %182 = vset.pattern.permute.xlu0 %v215_v4 }
   0x2   :  { %v83_v2 = vld [vmem:[%s264_s1] sm:$0xff]  ;;  %v104_v3 = vsel %vm97_vm0, %v81_v0, -inf }
   0x3   :  { %7 = vsyncpa [#allocation3], 0  ;;  %105 = vmax.xlane.f32.xlu0 %v104_v3  ;;  %88 = vperm.xlu1 %181, %v83_v2   ;;  %v107_v5 = vsel %vm97_vm0, %v82_v1, -inf  ;;  %v84_v6 = vld [vmem:[%s264_s1 + $0x8] sm:$0xff]  ;;  %v85_v11 = vlaneseq  ;;  %v216_v25 = vmov 0.0   ;;  %s217_s0 = smov [#allocation2]  }
   0x4   :  { %80 = vst [vmem:[#allocation2] sm:$0x1] %v216_v25  ;;  %s158_s1 = sshll.u32 %s217_s0, 4  ;;  %s159_s1 = int_to_ptr.vmem [resolvable:$true] %s158_s1 }
   0x5   :  { %v86_v15 = vand.u32 127, %v85_v11  ;;  %s191_s17 = scalar_lea.vmem %s159_s1, 16  ;;  %s195_s18 = scalar_lea.vmem %s159_s1, 32 }
   0x6   :  { %p192_p0 = scmp.ne.s32.totalorder %s159_s1, %s191_s17  ;;  %p196_p1 = scmp.lt.s32.totalorder %s159_s1, %s159_s1 }
   0x7   :  { %108 = vmax.xlane.f32.xlu0 %v107_v5  ;;  %91 = vperm.xlu1 %181, %v84_v6   ;;  %p197_p2 = scmp.lt.s32.totalorder %s195_s18, %s191_s17 }
   0x9   :  { %p198_p3 = por %p197_p2, %p196_p1 }
   0xb   :  { %v142_v44 = vld [vmem:[#allocation2] sm:$0x1]  ;;  %p199_p4 = pnand %p198_p3, %p192_p0 }
  0x82   :  { %v89_v14 = vpop.permute.xlu1 %88 }
  0x83   :  { %vm93_vm1 = vcmp.eq.s32.totalorder %v86_v15, %v89_v14 }
  0x84   :  { %v95_v18 = vsel %vm93_vm1, %v81_v0, 0.0 }
  0x85   :  { %v98_v20 = vsel %vm97_vm0, %v95_v18, 0.0 }
  0x86   :  { %v92_v16 = vpop.permute.xlu1 %91 }
  0x87   :  { %vm94_vm2 = vcmp.eq.s32.totalorder %v86_v15, %v92_v16 }
  0x88   :  { %v96_v22 = vsel %vm94_vm2, %v82_v1, 0.0 }
  0x89   :  { %v101_v24 = vsel %vm97_vm0, %v96_v22, 0.0 }
  0x90   :  { %v106_v7 = vpop.xlane.xlu0 %105 }
  0x91   :  { %v110_v8 = vsub.f32 %v81_v0, %v106_v7 }
  0x93   :  { %v112_v9 = vmul.f32 1.442695, %v110_v8 }
  0x94   :  { %v109_v10 = vpop.xlane.xlu0 %108 }
  0x95   :  { %183 = vpow2.f32 %v112_v9  ;;  %v111_v12 = vsub.f32 %v82_v1, %v109_v10 }
  0x97   :  { %v114_v13 = vmul.f32 1.442695, %v111_v12 }
  0x99   :  { %185 = vpow2.f32 %v114_v13 }
  0x9f   :  { %v184_v17 = vpop.eup %183 }
  0xa0   :  { %v116_v19 = vsel %vm97_vm0, %v184_v17, 0.0 }
  0xa1   :  { %117 = vadd.xlane.f32.xlu0 %v116_v19 }
  0xa3   :  { %v186_v21 = vpop.eup %185 }
  0xa4   :  { %v119_v23 = vsel %vm97_vm0, %v186_v21, 0.0 }
  0xa5   :  { %120 = vadd.xlane.f32.xlu1 %v119_v23  ;;  %99 = vadd.xlane.f32.xlu0 %v98_v20 }
  0xa9   :  { %102 = vadd.xlane.f32.xlu0 %v101_v24 }
 0x12e   :  { %v118_v26 = vpop.xlane.xlu0 %117 }
 0x12f   :  { %187 = vlog2.f32 %v118_v26 }
 0x132   :  { %v121_v27 = vpop.xlane.xlu1 %120  ;;  %v100_v30 = vpop.xlane.xlu0 %99 }
 0x133   :  { %189 = vlog2.f32 %v121_v27 }
 0x136   :  { %v103_v35 = vpop.xlane.xlu0 %102 }
 0x139   :  { %v188_v28 = vpop.eup %187 }
 0x13a   :  { %v123_v29 = vmul.f32 0.6931472, %v188_v28 }
 0x13c   :  { %v126_v33 = vadd.f32 %v123_v29, %v106_v7 }
 0x13d   :  { %v190_v31 = vpop.eup %189 }
 0x13e   :  { %v125_v32 = vmul.f32 0.6931472, %v190_v31  ;;  %v128_v36 = vsub.f32 %v126_v33, %v100_v30 }
 0x140   :  { %v127_v34 = vadd.f32 %v125_v32, %v109_v10 }
 0x142   :  { %v129_v37 = vsub.f32 %v127_v34, %v103_v35 }
 0x144   :  { %v143_v38 = vadd.f32 %v129_v37, %v128_v36 }
 0x146   :  { %v144_v39 = vrot.slane %v143_v38, 4 }
 0x148   :  { %v145_v40 = vadd.f32 %v144_v39, %v143_v38 }
 0x14a   :  { %v146_v41 = vrot.slane %v145_v40, 2 }
 0x14c   :  { %v147_v42 = vadd.f32 %v146_v41, %v145_v40 }
 0x14e   :  { %v148_v43 = vrot.slane %v147_v42, 1 }
 0x150   :  { %v149_v45 = vadd.f32 %v148_v43, %v147_v42 }
 0x152   :  { %v150_v46 = vadd.f32 %v149_v45, %v142_v44 }
 0x154   :  { %151 = vst [vmem:[#allocation2] sm:$0x1] %v150_v46 }
 0x155   :  { %202 = shalt.err (!%p199_p4)
}
 0x156   :  { %s203_s21 = scalar_lea.hbm %s265_s2, 16 }
 0x157   :  { %p204_p5 = scmp.ne.s32.totalorder %s265_s2, %s203_s21  ;;  %p207_p6 = scmp.lt.u32.totalorder %s203_s21, %s265_s2 }
 0x159   :  { %p209_p7 = pnand %p207_p6, %p204_p5 }
 0x15b   :  { %212 = shalt.err (!%p209_p7)
}
 0x15c   :  { %161 = dma.vmem_to_hbm [thread:$0]  %s159_s1, 16, %s265_s2, [#allocation3]  }
 0x15d   :  { %213 = dma.done.wait [#allocation3], 16  }
 0x15e   :  { %214 = vsyncadd [#allocation3], 4294967280 }
 0x15f   :  { %165 = vsyncpa [#allocation3], 1 }

</bundles_post_ra>
